<compile_context>
chip_gen: v7x
topology: tpu7x:2x2x1
jax: 0.10.0
libtpu: 0.0.40
codegen_flags: <defaults>
</compile_context>

<pallas_src>
import jax
import jax.numpy as jnp
from jax.experimental import pallas as pl
from jax.experimental.pallas import tpu as pltpu

_LANE = 128
_SUBLANE = 8
# Conservative per-core VMEM budget for the fused (fully resident) path.
# Fits v5e/v6e (128 MiB) and v7x (64 MiB per TensorCore) with headroom.
_FUSED_VMEM_BUDGET = 40 * 1024 * 1024
_VMEM_LIMIT_CAP = 64 * 1024 * 1024


def _round_up(x, m):
    return (x + m - 1) // m * m


def _pick_tile(dim, cap):
    """Largest sublane-aligned tile <= cap that divides `dim` (else full dim)."""
    if dim <= cap:
        return dim
    t = (cap // _SUBLANE) * _SUBLANE
    while t >= _SUBLANE:
        if dim % t == 0:
            return t
        t -= _SUBLANE
    return dim


def _pick_lane_tile(dim, cap):
    """Largest lane-aligned (128) tile <= cap that divides `dim` (else full dim)."""
    if dim <= cap:
        return dim
    t = (cap // _LANE) * _LANE
    while t >= _LANE:
        if dim % t == 0:
            return t
        t -= _LANE
    return dim


# --------------------- fused kernel: the primary path ----------------------
def _fused_kernel(text_ref, adj_ref, w_ref, bias_ref, out_ref, hid_ref):
    # text_ref: (N_pad, Fin_pad)   resident per batch (index (b, 0, 0))
    # adj_ref : (tm, N_pad)        streaming row tile
    # w_ref   : (Fin_pad, Fout_pad), bias_ref: (1, Fout_pad)   resident
    # out_ref : (tm, Fout_pad)     f32
    # hid_ref : (N_pad, Fout_pad)  f32 VMEM scratch, computed once per batch
    i = pl.program_id(1)

    @pl.when(i == 0)
    def _():
        hid_ref[...] = jnp.dot(
            text_ref[...], w_ref[...], preferred_element_type=jnp.float32
        )

    adj = adj_ref[...]
    # Padded adj columns are zero, so the full-row sum equals the true row sum.
    denom = jnp.sum(adj, axis=1, keepdims=True) + 1.0
    agg = jnp.dot(adj, hid_ref[...], preferred_element_type=jnp.float32)
    out_ref[...] = agg * pl.reciprocal(denom, approx=False) + bias_ref[...]


def _fused_forward(text_p, adj_p, w_p, bias_p, tm):
    B, N_pad, Fin_pad = text_p.shape
    Fout_pad = w_p.shape[1]
    grid = (B, N_pad // tm)

    vmem_bytes = 4 * (
        2 * N_pad * Fin_pad        # text block (double-buffered)
        + 2 * tm * N_pad           # adj block (double-buffered)
        + 2 * Fin_pad * Fout_pad   # weight (resident)
        + 2 * _SUBLANE * Fout_pad  # bias (sublane-padded)
        + 2 * tm * Fout_pad        # out block (double-buffered)
        + N_pad * Fout_pad         # hidden scratch
    )
    vmem_limit = min(int(vmem_bytes * 1.25) + (4 << 20), _VMEM_LIMIT_CAP)

    cost = pl.CostEstimate(
        flops=2 * B * N_pad * Fin_pad * Fout_pad
        + 2 * B * N_pad * N_pad * Fout_pad
        + B * N_pad * N_pad,
        transcendentals=0,
        bytes_accessed=4
        * (
            B * N_pad * Fin_pad
            + B * N_pad * N_pad
            + Fin_pad * Fout_pad
            + Fout_pad
            + B * N_pad * Fout_pad
        ),
    )

    return pl.pallas_call(
        _fused_kernel,
        out_shape=jax.ShapeDtypeStruct((B, N_pad, Fout_pad), jnp.float32),
        grid_spec=pltpu.PrefetchScalarGridSpec(
            num_scalar_prefetch=0,
            grid=grid,
            in_specs=[
                pl.BlockSpec((pl.Squeezed(), N_pad, Fin_pad), lambda b, i: (b, 0, 0)),
                pl.BlockSpec((pl.Squeezed(), tm, N_pad), lambda b, i: (b, i, 0)),
                pl.BlockSpec((Fin_pad, Fout_pad), lambda b, i: (0, 0)),
                pl.BlockSpec((1, Fout_pad), lambda b, i: (0, 0)),
            ],
            out_specs=pl.BlockSpec(
                (pl.Squeezed(), tm, Fout_pad), lambda b, i: (b, i, 0)
            ),
            scratch_shapes=[pltpu.VMEM((N_pad, Fout_pad), jnp.float32)],
        ),
        compiler_params=pltpu.CompilerParams(
            # Batch axis is megacore-parallel (v7x 2 TCs); the row axis must
            # stay "arbitrary" since row tiles of a batch share the hidden
            # scratch computed at i == 0.
            dimension_semantics=("parallel", "arbitrary"),
            vmem_limit_bytes=vmem_limit,
        ),
        cost_estimate=cost,
    )(text_p, adj_p, w_p, bias_p)


# --------------- fallback path (very large N * Fout): two stages ------------
def _hidden_kernel(text_ref, w_ref, out_ref):
    out_ref[...] = jnp.dot(
        text_ref[...], w_ref[...], preferred_element_type=jnp.float32
    )


def _dense_matmul(text_flat, w_p):
    M, Fin_pad = text_flat.shape
    Fout_pad = w_p.shape[1]
    tm = _pick_tile(M, 1024)  # streaming GEMM: large row tiles cut step overhead
    grid = (M // tm,)

    vmem_bytes = 4 * (2 * tm * Fin_pad + 2 * Fin_pad * Fout_pad + 2 * tm * Fout_pad)
    vmem_limit = min(int(vmem_bytes * 1.25) + (4 << 20), _VMEM_LIMIT_CAP)
    cost = pl.CostEstimate(
        flops=2 * M * Fin_pad * Fout_pad,
        transcendentals=0,
        bytes_accessed=4 * (M * Fin_pad + Fin_pad * Fout_pad + M * Fout_pad),
    )
    return pl.pallas_call(
        _hidden_kernel,
        out_shape=jax.ShapeDtypeStruct((M, Fout_pad), jnp.float32),
        grid_spec=pltpu.PrefetchScalarGridSpec(
            num_scalar_prefetch=0,
            grid=grid,
            in_specs=[
                pl.BlockSpec((tm, Fin_pad), lambda i: (i, 0)),
                pl.BlockSpec((Fin_pad, Fout_pad), lambda i: (0, 0)),  # resident
            ],
            out_specs=pl.BlockSpec((tm, Fout_pad), lambda i: (i, 0)),
        ),
        compiler_params=pltpu.CompilerParams(
            dimension_semantics=("parallel",),
            vmem_limit_bytes=vmem_limit,
        ),
        cost_estimate=cost,
    )(text_flat, w_p)


def _agg_ksplit_kernel(adj_ref, hid_ref, bias_ref, out_ref, den_ref):
    # Output block index (b, i, 0) is invariant across k -> out_ref is the
    # VMEM-resident f32 accumulator (no separate acc scratch).
    k = pl.program_id(2)

    @pl.when(k == 0)
    def _():
        out_ref[...] = jnp.zeros_like(out_ref)
        den_ref[...] = jnp.ones_like(den_ref)  # the "+1" in the denominator

    adj = adj_ref[...]
    out_ref[...] += jnp.dot(adj, hid_ref[...], preferred_element_type=jnp.float32)
    den_ref[...] += jnp.sum(adj, axis=1, keepdims=True)

    @pl.when(k == pl.num_programs(2) - 1)
    def _():
        out_ref[...] = (
            out_ref[...] * pl.reciprocal(den_ref[...], approx=False) + bias_ref[...]
        )


def _aggregate_ksplit(adj_p, hidden, bias_p):
    B, N_pad, _ = adj_p.shape
    Fout_pad = hidden.shape[2]
    tm = _pick_tile(N_pad, 512)
    tk = _pick_lane_tile(N_pad, 512)
    grid = (B, N_pad // tm, N_pad // tk)

    vmem_bytes = 4 * (
        2 * tm * tk
        + 2 * tk * Fout_pad
        + 2 * _SUBLANE * Fout_pad
        + 2 * tm * Fout_pad
        + tm * _LANE  # (tm, 1) denom scratch pads to a full lane
    )
    vmem_limit = min(int(vmem_bytes * 1.25) + (4 << 20), _VMEM_LIMIT_CAP)
    cost = pl.CostEstimate(
        flops=2 * B * N_pad * N_pad * Fout_pad + B * N_pad * N_pad,
        transcendentals=0,
        bytes_accessed=4
        * (
            B * N_pad * N_pad
            + B * (N_pad // tm) * N_pad * Fout_pad  # hidden re-read per row tile
            + B * N_pad * Fout_pad
            + Fout_pad
        ),
    )
    return pl.pallas_call(
        _agg_ksplit_kernel,
        out_shape=jax.ShapeDtypeStruct((B, N_pad, Fout_pad), jnp.float32),
        grid_spec=pltpu.PrefetchScalarGridSpec(
            num_scalar_prefetch=0,
            grid=grid,
            in_specs=[
                pl.BlockSpec((pl.Squeezed(), tm, tk), lambda b, i, k: (b, i, k)),
                pl.BlockSpec((pl.Squeezed(), tk, Fout_pad), lambda b, i, k: (b, k, 0)),
                pl.BlockSpec((1, Fout_pad), lambda b, i, k: (0, 0)),  # resident
            ],
            out_specs=pl.BlockSpec(
                (pl.Squeezed(), tm, Fout_pad), lambda b, i, k: (b, i, 0)
            ),
            scratch_shapes=[pltpu.VMEM((tm, 1), jnp.float32)],
        ),
        compiler_params=pltpu.CompilerParams(
            dimension_semantics=("parallel", "parallel", "arbitrary"),
            vmem_limit_bytes=vmem_limit,
        ),
        cost_estimate=cost,
    )(adj_p, hidden, bias_p)


# ------------------------------- wrapper ------------------------------------
def graph_convolution(
    text, adj, weight, bias=None, *, fused_vmem_budget=_FUSED_VMEM_BUDGET
):
    text = jnp.asarray(text, jnp.float32)
    adj = jnp.asarray(adj, jnp.float32)
    weight = jnp.asarray(weight, jnp.float32)

    B, N, Fin = text.shape
    Fout = weight.shape[1]
    assert adj.shape == (B, N, N)
    assert weight.shape[0] == Fin

    # Lane-dense feature axes (zero padding is numerically free).
    Fin_pad = _round_up(Fin, _LANE)
    Fout_pad = _round_up(Fout, _LANE)

    w_p = jnp.pad(weight, ((0, Fin_pad - Fin), (0, Fout_pad - Fout)))
    if bias is None:
        bias_p = jnp.zeros((1, Fout_pad), jnp.float32)
    else:
        bias_p = jnp.pad(
            jnp.asarray(bias, jnp.float32).reshape(1, Fout),
            ((0, 0), (0, Fout_pad - Fout)),
        )

    # ---- fused single-kernel path: hidden[b] resident in VMEM --------------
    # N only needs sublane (8) alignment: the lane axes are Fin_pad / Fout_pad
    # / the full adj row, so small graphs are not inflated to 128.
    N_pad = _round_up(N, _SUBLANE)
    tm = _pick_tile(N_pad, 512)
    fused_vmem = 4 * (
        2 * N_pad * Fin_pad
        + 2 * tm * N_pad
        + 2 * Fin_pad * Fout_pad
        + 2 * _SUBLANE * Fout_pad
        + 2 * tm * Fout_pad
        + N_pad * Fout_pad
    )

    if fused_vmem <= fused_vmem_budget:
        text_p = jnp.pad(text, ((0, 0), (0, N_pad - N), (0, Fin_pad - Fin)))
        adj_p = jnp.pad(adj, ((0, 0), (0, N_pad - N), (0, N_pad - N)))
        out_p = _fused_forward(text_p, adj_p, w_p, bias_p, tm)
        # Padded rows produce out = bias, padded feature columns are zero.
        return out_p[:, :N, :Fout]

    # ---- fallback: two-stage with k-split reduction (very large N * Fout) --
    N_pad = _round_up(N, _LANE)  # k-split needs a lane-aligned adj column tile
    text_p = jnp.pad(text, ((0, 0), (0, N_pad - N), (0, Fin_pad - Fin)))
    adj_p = jnp.pad(adj, ((0, 0), (0, N_pad - N), (0, N_pad - N)))
    hidden = _dense_matmul(text_p.reshape(B * N_pad, Fin_pad), w_p)
    hidden = hidden.reshape(B, N_pad, Fout_pad)
    out_p = _aggregate_ksplit(adj_p, hidden, bias_p)
    return out_p[:, :N, :Fout]


if __name__ == "__main__":
    # Small shapes consistent with the module: B=2 sentences, N=8 nodes,
    # in_features=16, out_features=32.
    B, N, Fin, Fout = 2, 8, 16, 32

    key = jax.random.PRNGKey(0)
    k_text, k_adj, k_w, k_b = jax.random.split(key, 4)

    # Deterministic synthetic parameters (randn-style), analogous to
    # torch.manual_seed(5); not a checkpoint load.
    weight = jax.random.normal(k_w, (Fin, Fout), dtype=jnp.float32)
    bias = jax.random.normal(k_b, (Fout,), dtype=jnp.float32)

    text = jax.random.normal(k_text, (B, N, Fin), dtype=jnp.float32)
    adj = jax.random.uniform(k_adj, (B, N, N), dtype=jnp.float32)

    # Reference in plain JAX (same math as the PyTorch forward).
    hidden_ref = jnp.matmul(text, weight)
    denom_ref = jnp.sum(adj, axis=2, keepdims=True) + 1.0
    ref = jnp.matmul(adj, hidden_ref) / denom_ref + bias

    # Primary fused path.
    out = graph_convolution(text, adj, weight, bias)
    out = jax.block_until_ready(out)
    assert out.shape == (B, N, Fout)
    assert jnp.allclose(out, ref, atol=1e-4, rtol=1e-4)

    # Also exercise the large-problem k-split fallback by forcing a tiny
    # fused-VMEM budget.
    out_fb = graph_convolution(text, adj, weight, bias, fused_vmem_budget=1)
    out_fb = jax.block_until_ready(out_fb)
    assert jnp.allclose(out_fb, ref, atol=1e-4, rtol=1e-4)

    print("KERNEL_OK")
</pallas_src>

<mosaic_0001>
module attributes {stable_mosaic.version = 11 : i64} {
  func.func @_fused_kernel(%arg0: i32, %arg1: i32, %arg2: memref<1x8x128xf32, #tpu.memory_space<vmem>>, %arg3: memref<1x8x8xf32, #tpu.memory_space<vmem>>, %arg4: memref<128x128xf32, #tpu.memory_space<vmem>>, %arg5: memref<1x128xf32, #tpu.memory_space<vmem>>, %arg6: memref<1x8x128xf32, #tpu.memory_space<vmem>>, %arg7: memref<8x128xf32, #tpu.memory_space<vmem>>) attributes {dimension_semantics = [#tpu.dimension_semantics<parallel>, #tpu.dimension_semantics<arbitrary>], iteration_bounds = array<i64: 2, 1>, scalar_prefetch = 0 : i64, scratch_operands = 1 : i64, tpu.core_type = #tpu.core_type<tc>, window_params = [{transform_indices = @transform_0, window_bounds = array<i64: 1, 8, 128>}, {transform_indices = @transform_1, window_bounds = array<i64: 1, 8, 8>}, {pipeline_mode = #tpu.pipeline_mode<synchronous>, transform_indices = @transform_2, window_bounds = array<i64: 128, 128>}, {pipeline_mode = #tpu.pipeline_mode<synchronous>, transform_indices = @transform_3, window_bounds = array<i64: 1, 128>}, {transform_indices = @transform_4, window_bounds = array<i64: 1, 8, 128>}]} {
    %c0_i32 = arith.constant 0 : i32
    %0 = arith.cmpi eq, %arg1, %c0_i32 : i32
    %1 = arith.extui %0 : i1 to i32
    %c0_i32_0 = arith.constant 0 : i32
    %2 = arith.cmpi ne, %1, %c0_i32_0 : i32
    scf.if %2 {
      %c0_12 = arith.constant 0 : index
      %c0_13 = arith.constant 0 : index
      %c0_14 = arith.constant 0 : index
      %20 = vector.load %arg2[%c0_12, %c0_13, %c0_14] : memref<1x8x128xf32, #tpu.memory_space<vmem>>, vector<1x8x128xf32>
      %21 = vector.shape_cast %20 : vector<1x8x128xf32> to vector<8x128xf32>
      %c0_15 = arith.constant 0 : index
      %c0_16 = arith.constant 0 : index
      %22 = vector.load %arg4[%c0_15, %c0_16] : memref<128x128xf32, #tpu.memory_space<vmem>>, vector<128x128xf32>
      %cst_17 = arith.constant dense<0.000000e+00> : vector<8x128xf32>
      %23 = tpu.matmul %21, %22, %cst_17 {dimension_numbers = #tpu.dot_dimension_numbers<[1], [0], [0], [1], [0, 0, 1, 1], [], []>} : vector<8x128xf32>, vector<128x128xf32>, vector<8x128xf32> -> vector<8x128xf32>
      %c0_18 = arith.constant 0 : index
      %c0_19 = arith.constant 0 : index
      %24 = vector.load %arg7[%c0_18, %c0_19] : memref<8x128xf32, #tpu.memory_space<vmem>>, vector<8x128xf32>
      tpu.vector_store %arg7[%c0_18, %c0_19], %23 {strides = array<i32>} : memref<8x128xf32, #tpu.memory_space<vmem>>, vector<8x128xf32>,
    } else {
    }
    %c0 = arith.constant 0 : index
    %c0_1 = arith.constant 0 : index
    %c0_2 = arith.constant 0 : index
    %3 = vector.load %arg3[%c0, %c0_1, %c0_2] : memref<1x8x8xf32, #tpu.memory_space<vmem>>, vector<1x8x8xf32>
    %4 = vector.shape_cast %3 : vector<1x8x8xf32> to vector<8x8xf32>
    %cst = arith.constant dense<0.000000e+00> : vector<8xf32>
    %5 = vector.multi_reduction <add>, %4, %cst [1] : vector<8x8xf32> to vector<8xf32>
    %6 = vector.shape_cast %5 : vector<8xf32> to vector<8x1xf32>
    %cst_3 = arith.constant 1.000000e+00 : f32
    %7 = vector.broadcast %cst_3 : f32 to vector<8x1xf32>
    %8 = arith.addf %6, %7 : vector<8x1xf32>
    %c0_4 = arith.constant 0 : index
    %c0_5 = arith.constant 0 : index
    %9 = vector.load %arg7[%c0_4, %c0_5] : memref<8x128xf32, #tpu.memory_space<vmem>>, vector<8x128xf32>
    %cst_6 = arith.constant dense<0.000000e+00> : vector<8x128xf32>
    %10 = tpu.matmul %4, %9, %cst_6 {dimension_numbers = #tpu.dot_dimension_numbers<[1], [0], [0], [1], [0, 0, 1, 1], [], []>} : vector<8x8xf32>, vector<8x128xf32>, vector<8x128xf32> -> vector<8x128xf32>
    %11 = tpu.reciprocal %8 : vector<8x1xf32> -> vector<8x1xf32>
    %12 = vector.broadcast %11 : vector<8x1xf32> to vector<8x128xf32>
    %13 = arith.mulf %10, %12 : vector<8x128xf32>
    %c0_7 = arith.constant 0 : index
    %c0_8 = arith.constant 0 : index
    %14 = vector.load %arg5[%c0_7, %c0_8] : memref<1x128xf32, #tpu.memory_space<vmem>>, vector<1x128xf32>
    %15 = vector.broadcast %14 : vector<1x128xf32> to vector<8x128xf32>
    %16 = arith.addf %13, %15 : vector<8x128xf32>
    %c0_9 = arith.constant 0 : index
    %c0_10 = arith.constant 0 : index
    %c0_11 = arith.constant 0 : index
    %17 = vector.load %arg6[%c0_9, %c0_10, %c0_11] : memref<1x8x128xf32, #tpu.memory_space<vmem>>, vector<1x8x128xf32>
    %18 = vector.shape_cast %17 : vector<1x8x128xf32> to vector<8x128xf32>
    %19 = vector.shape_cast %16 : vector<8x128xf32> to vector<1x8x128xf32>
    tpu.vector_store %arg6[%c0_9, %c0_10, %c0_11], %19 {strides = array<i32>} : memref<1x8x128xf32, #tpu.memory_space<vmem>>, vector<1x8x128xf32>,
    return
  }
  func.func @transform_0(%arg0: i32, %arg1: i32) -> (i32, i32, i32) {
    %c0_i32 = arith.constant 0 : i32
    %c0_i32_0 = arith.constant 0 : i32
    %c0_i32_1 = arith.constant 0 : i32
    return %arg0, %c0_i32, %c0_i32_0 : i32, i32, i32
  }
  func.func @transform_1(%arg0: i32, %arg1: i32) -> (i32, i32, i32) {
    %c0_i32 = arith.constant 0 : i32
    %c0_i32_0 = arith.constant 0 : i32
    return %arg0, %arg1, %c0_i32 : i32, i32, i32
  }
  func.func @transform_2(%arg0: i32, %arg1: i32) -> (i32, i32) {
    %c0_i32 = arith.constant 0 : i32
    %c0_i32_0 = arith.constant 0 : i32
    %c0_i32_1 = arith.constant 0 : i32
    return %c0_i32, %c0_i32_0 : i32, i32
  }
  func.func @transform_3(%arg0: i32, %arg1: i32) -> (i32, i32) {
    %c0_i32 = arith.constant 0 : i32
    %c0_i32_0 = arith.constant 0 : i32
    %c0_i32_1 = arith.constant 0 : i32
    return %c0_i32, %c0_i32_0 : i32, i32
  }
  func.func @transform_4(%arg0: i32, %arg1: i32) -> (i32, i32, i32) {
    %c0_i32 = arith.constant 0 : i32
    %c0_i32_0 = arith.constant 0 : i32
    return %arg0, %arg1, %c0_i32 : i32, i32, i32
  }
}

</mosaic_0001>

<bundles_post_ra>
// kernel: tpu_custom_call.1
= control target key start
LH: loop header
LB: loop body
LE: loop exit
PB: predicated region body
PF: predicated region fallthrough
CT: control target
= control target key end

     0   :  { %s1251_s0 = inlined_call_operand.hbm [shape: f32[2,8,128], index: 0, kind: input, shape index: {}]   ;;  %s1252_s1 = inlined_call_operand.hbm [shape: f32[2,8,8], index: 1, kind: input, shape index: {}]   ;;  %s1253_s2 = inlined_call_operand.hbm [shape: f32[128,128], index: 2, kind: input, shape index: {}]   ;;  %s1254_s3 = inlined_call_operand.vmem [shape: f32[1,128], index: 3, kind: input, shape index: {}]   ;;  %s1255_s4 = inlined_call_operand.hbm [shape: f32[2,8,128], index: 4, kind: output, shape index: {}]  }
   0x1   :  { %1262 = sst [smem:[#allocation16_spill]] %s1253_s2 }
   0x2   :  { %9 = vsyncpa [#allocation4], 0 }
   0x3   :  { %11 = vsyncpa [#allocation4 + $0x1], 0 }
   0x4   :  { %12 = vsyncpa [#allocation7], 0 }
   0x5   :  { %14 = vsyncpa [#allocation7 + $0x1], 0 }
   0x6   :  { %15 = vsyncpa [#allocation5], 0 }
   0x7   :  { %17 = vsyncpa [#allocation5 + $0x1], 0  ;;  %s993_s15 = smov 0   ;;  %s995_s16 = smov 0  }
   0x8   :  { %s997_s17 = smov 0   ;;  %s999_s18 = smov 0  }
   0x9   :  { %s1001_s19 = smov 0   ;;  %s1003_s20 = smov 0  }
   0xa LB: > { %1263 = sst [smem:[#allocation14_spill]] %s953_s19  ;;  %s1024_s21 = sadd.s32 4294967295, %s957_s20   ;;  %s957_s20 = sphi %s1003_s20, %s23_s20   ;;  %s953_s19 = sphi %s1001_s19, %s1282_s19   ;;  %s949_s18 = sphi %s999_s18, %s1281_s18   ;;  %s945_s17 = sphi %s997_s17, %s1285_s17   ;;  %s941_s16 = sphi %s995_s16, %s1284_s16   ;;  %s937_s15 = sphi %s993_s15, %s1283_s15  }
   0xb   : > { %s592_s22 = sadd.s32 4294967294, %s957_s20   ;;  %p55_p0 = scmp.ne.s32.totalorder %s941_s16, %s937_s15 }
   0xc   : > { %p1256_p1 = scmp.eq.s32.totalorder %s1024_s21, 0  ;;  %p157_p3 = scmp.eq.s32.totalorder %s592_s22, 1 }
   0xd   : > { %p593_p5 = scmp.ge.s32.totalorder %s957_s20, 1  ;;  %p164_p7 = scmp.lt.s32.totalorder %s957_s20, 3 }
   0xe   : > { %p1033_p4 = por %p1256_p1, %p55_p0  ;;  %p1038_p6 = por %p157_p3, %p55_p0 }
   0xf   : > { %p1043_p8 = pnand %p593_p5, %p164_p7  ;;  %s959_s26 = smov [#allocation8]  }
  0x10   : > { %s1264_s23 = scalar_select %p1033_p4, 1, 0 }
  0x11   : > { %s1265_s24 = scalar_select %p1038_p6, 1, 0 }
  0x12   : > { %s1266_s25 = scalar_select %p1043_p8, 1, 0 }
  0x13   : > { %s176_s27 = sshll.u32 %s959_s26, 4  ;;  %p704_p9 = pneg %p1043_p8  ;;  %s177_s27 = int_to_ptr.vmem [resolvable:$true] %s176_s27 }
  0x14   : > { %s35_s29 = sadd.s32 1, %s953_s19  ;;  %s1268_s2 = sld [smem:[#allocation16_spill]] }
  0x15   : > { %p1052_p11 = pnand %p704_p9, %p1256_p1 }
  0x17   : > { %p781_p13 = pneg %p1052_p11 }
  0x1a   : > { %s779_s6 = scalar_lea.hbm %s1268_s2, 2048 }
  0x1b   : > { %p780_p12 = scmp.ne.s32.totalorder %s1268_s2, %s779_s6  ;;  %p786_p5 = scmp.lt.u32.totalorder %s779_s6, %s1268_s2 }
  0x1d   : > { %p782_p0 = pnand %p781_p13, %p780_p12 }
  0x1f   : > { %p783_p3 = pneg %p782_p0 }
  0x21   : > { %p788_p7 = pnand %p786_p5, %p783_p3 }
  0x23   : > { %791 = shalt.err (!%p788_p7)
}
  0x24   : > { %s792_s11 = scalar_lea.vmem %s177_s27, 2048  ;;  %p800_p2 = scmp.lt.s32.totalorder %s177_s27, %s177_s27 }
  0x25   : > { %p793_p9 = scmp.ne.s32.totalorder %s177_s27, %s792_s11  ;;  %p801_p6 = scmp.lt.s32.totalorder %s792_s11, %s792_s11 }
  0x27   : > { %p795_p10 = pnand %p793_p9, %p781_p13  ;;  %p802_p4 = por %p801_p6, %p800_p2 }
  0x29   : > { %p796_p1 = pneg %p795_p10 }
  0x2b   : > { %p803_p8 = pnand %p802_p4, %p796_p1 }
  0x2d   : > { %806 = shalt.err (!%p803_p8)
}
  0x2e   : > { %s960_s12 = smov 128   ;;  %s961_s13 = smov 8  }
  0x2f   : > { %707 = dma.hbm_to_vmem [thread:$0]  (!%p1052_p11), %s1268_s2, 2048, %s177_s27, [#allocation7], %s960_s12, %s960_s12, %s961_s13  }
  0x30   : > { %p37_p1 = scmp.ge.s32.totalorder %s35_s29, 2  ;;  %s42_s26 = sadd.s32 1, %s945_s17 }
  0x31   : > { %p49_p2 = scmp.ne.s32.totalorder %s945_s17, %s941_s16  ;;  %p50_p4 = scmp.eq.s32.totalorder %s957_s20, 0 }
  0x32   : > { %s1287_s29 = smov (%p37_p1, %s35_s29), 0  ;;  %p1271_p8 = scmp.eq.s32.totalorder %s1024_s21, 1 }
  0x33   : > { %1269 = sst [smem:[#allocation15_spill]] %s1287_s29  ;;  %p1079_p6 = por %p50_p4, %p49_p2 }
  0x34   : > { %p1085_p10 = por %p1271_p8, %p49_p2  ;;  %s39_s5 = ssub.s32 %s953_s19, %s1287_s29 }
  0x35   : > { %p720_p11 = scmp.lt.s32.totalorder %s957_s20, 2  ;;  %p40_p12 = scmp.eq.s32.totalorder %s39_s5, 0 }
  0x36   : > { %s1272_s28 = scalar_select %p1085_p10, 1, 0 }
  0x37   : > { %s193_s27 = sand.u32 1, %s945_s17   ;;  %s597_s8 = sshll.u32 %s953_s19, 7 }
  0x38   : > { %s1093_s6 = sshll.u32 %s193_s27, 3  ;;  %s1102_s11 = scalar_lea.hbm %s1251_s0, %s597_s8 }
  0x39   : > { %s1096_s7 = scalar_select %p40_p12, %s945_s17, %s42_s26  }
  0x3a   : > { %s197_s12 = scalar_lea.vmem [#allocation3], %s1093_s6  ;;  %p1109_p13 = pnand %p720_p11, %p1079_p6 }
  0x3b   : > { %s204_s13 = sshll.u32 %s197_s12, 4  ;;  %s1116_s5 = scalar_lea.hbm %s1252_s1, %s597_s8  ;;  %s1105_s13 = int_to_ptr.vmem [resolvable:$true] %s204_s13 }
  0x3c   : > { %s211_s9 = sand.u32 1, %s957_s20   ;;  %s194_s10 = scalar_lea.sflag [#allocation4], %s193_s27 }
  0x3d   : > { %s807_s2 = scalar_lea.hbm %s1102_s11, 128  ;;  %p809_p3 = pneg %p1109_p13 }
  0x3e   : > { %p808_p0 = scmp.ne.s32.totalorder %s1102_s11, %s807_s2  ;;  %s812_s29 = scalar_lea.hbm %s1251_s0, 256 }
  0x3f   : > { %p813_p9 = scmp.lt.u32.totalorder %s1102_s11, %s1251_s0  ;;  %p814_p1 = scmp.lt.u32.totalorder %s812_s29, %s807_s2 }
  0x40   : > { %p810_p5 = pnand %p809_p3, %p808_p0  ;;  %p816_p4 = scmp.lt.u32.totalorder %s807_s2, %s1102_s11 }
  0x41   : > { %p815_p2 = por %p814_p1, %p813_p9 }
  0x42   : > { %p811_p7 = pneg %p810_p5 }
  0x43   : > { %p817_p6 = por %p816_p4, %p815_p2 }
  0x45   : > { %p818_p8 = pnand %p817_p6, %p811_p7 }
  0x47   : > { %821 = shalt.err (!%p818_p8)
}
  0x48   : > { %s822_s27 = scalar_lea.vmem %s1105_s13, 128  ;;  %s962_s8 = smov [#allocation3]  }
  0x49   : > { %p823_p11 = scmp.ne.s32.totalorder %s1105_s13, %s822_s27  ;;  %s827_s26 = sshll.u32 %s962_s8, 4  ;;  %s828_s26 = int_to_ptr.vmem [resolvable:$false] %s827_s26 }
  0x4a   : > { %s829_s19 = scalar_lea.vmem %s828_s26, 256  ;;  %p830_p5 = scmp.lt.s32.totalorder %s1105_s13, %s828_s26 }
  0x4b   : > { %p825_p12 = pnand %p823_p11, %p809_p3  ;;  %p831_p9 = scmp.lt.s32.totalorder %s829_s19, %s822_s27 }
  0x4d   : > { %p826_p0 = pneg %p825_p12  ;;  %p832_p1 = por %p831_p9, %p830_p5 }
  0x4f   : > { %p833_p2 = pnand %p832_p1, %p826_p0 }
  0x51   : > { %836 = shalt.err (!%p833_p2)
}
  0x52   : > { %711 = dma.hbm_to_vmem [thread:$0]  (!%p1109_p13), %s1102_s11, 128, %s1105_s13, %s194_s10  }
  0x53   : > { %s215_s2 = scalar_lea.vmem [#allocation6], %s1093_s6  ;;  %s212_s30 = scalar_lea.sflag [#allocation7], %s211_s9 }
  0x54   : > { %s223_s29 = sshll.u32 %s215_s2, 4  ;;  %s837_s12 = scalar_lea.hbm %s1116_s5, 128  ;;  %s224_s29 = int_to_ptr.vmem [resolvable:$true] %s223_s29 }
  0x55   : > { %p838_p7 = scmp.ne.s32.totalorder %s1116_s5, %s837_s12  ;;  %s842_s8 = scalar_lea.hbm %s1252_s1, 256 }
  0x56   : > { %p843_p8 = scmp.lt.u32.totalorder %s1116_s5, %s1252_s1  ;;  %p844_p11 = scmp.lt.u32.totalorder %s842_s8, %s837_s12 }
  0x57   : > { %p840_p4 = pnand %p838_p7, %p809_p3  ;;  %p846_p0 = scmp.lt.u32.totalorder %s837_s12, %s1116_s5 }
  0x58   : > { %p845_p12 = por %p844_p11, %p843_p8 }
  0x59   : > { %p841_p6 = pneg %p840_p4 }
  0x5a   : > { %p847_p5 = por %p846_p0, %p845_p12 }
  0x5c   : > { %p848_p9 = pnand %p847_p5, %p841_p6 }
  0x5e   : > { %851 = shalt.err (!%p848_p9)
}
  0x5f   : > { %s852_s6 = scalar_lea.vmem %s224_s29, 128  ;;  %s963_s11 = smov [#allocation6]  }
  0x60   : > { %p853_p1 = scmp.ne.s32.totalorder %s224_s29, %s852_s6  ;;  %s857_s13 = sshll.u32 %s963_s11, 4  ;;  %s858_s13 = int_to_ptr.vmem [resolvable:$false] %s857_s13 }
  0x61   : > { %s859_s9 = scalar_lea.vmem %s858_s13, 256  ;;  %p860_p4 = scmp.lt.s32.totalorder %s224_s29, %s858_s13 }
  0x62   : > { %p855_p2 = pnand %p853_p1, %p809_p3  ;;  %p861_p10 = scmp.lt.s32.totalorder %s859_s9, %s852_s6 }
  0x64   : > { %p856_p7 = pneg %p855_p2  ;;  %p862_p8 = por %p861_p10, %p860_p4 }
  0x66   : > { %p863_p11 = pnand %p862_p8, %p856_p7 }
  0x68   : > { %866 = shalt.err (!%p863_p11)
}
  0x69   : > { %714 = dma.hbm_to_vmem [thread:$0]  (!%p1109_p13), %s1116_s5, 128, %s224_s29, %s212_s30  }
  0x6a   : > { %p1274_p6 = scmp.ne.s32.totalorder %s1266_s25, 0 }
  0x6b   : > { %s1169_s10 = sand.u32 (!%p1274_p6), 1, %s941_s16   ;;  %p1275_p10 = scmp.ne.s32.totalorder (!%p1274_p6), %s1264_s23, 0 }
  0x6c   : > { %232 = sbr.rel (%p1274_p6) target bundleno = 599 (0x257), region = 36  ;;  %s1172_s2 = sshll.u32 (!%p1274_p6), %s1169_s10, 3 }
  0x6d   : > { %s235_s12 = scalar_lea.sflag (!%p1274_p6), [#allocation4], %s1169_s10  ;;  %s238_s22 = scalar_lea.vmem (!%p1274_p6), [#allocation3], %s1172_s2 }
  0x73   : > { %920 = dma.done.wait (%p1275_p10), %s235_s12, 128  }
  0x74   : > { %922 = vsyncadd (%p1275_p10), %s235_s12, 4294967168  ;;  %s243_s25 = sand.u32 1, %s1024_s21   ;;  %s247_s5 = scalar_lea.vmem [#allocation6], %s1172_s2 }
  0x75   : > { %s244_s14 = scalar_lea.sflag [#allocation7], %s243_s25 }
  0x76   : > { %924 = dma.done.wait (%p1275_p10), %s244_s14, 128  }
  0x77   : > { %926 = vsyncadd (%p1275_p10), %s244_s14, 4294967168  ;;  %p1276_p13 = scmp.eq.s32.totalorder %s1024_s21, 0 }
  0x79   : > { %928 = dma.done.wait (%p1276_p13), [#allocation7], 2048   ;;  %p1277_p3 = pmov %p1276_p13 }
  0x7a   : > { %v964_v0 = vmov 0.0|0.0   ;;  %vm965_vm0 = vmmov 0   ;;  %v966_v1 = vmov 0.0   ;;  %v286_v2 = vld [vmem:[#allocation8] sm:$0xff]  ;;  %v287_v3 = vld [vmem:[#allocation8 + $0x8] sm:$0xff]  ;;  %v288_v4 = vld [vmem:[#allocation8 + $0x10] sm:$0xff] }
  0x7b   : > { %930 = vsyncadd (%p1277_p3), [#allocation7], 4294965248  ;;  %670 = vmatprep.subr.bf16.mxu0 %v964_v0  ;;  %662 = vmatprep.mubr.msk.f32.mxu0 %vm965_vm0, %v966_v1  ;;  %v671_v5 = vpack.c.bf16 %v287_v3, %v286_v2  ;;  %v289_v6 = vld [vmem:[#allocation8 + $0x18] sm:$0xff]  ;;  %v290_v8 = vld [vmem:[#allocation8 + $0x20] sm:$0xff]  ;;  %vm374_vm1 = vcmask 64512   ;;  %s608_s29 = sshll.u32 %s949_s18, 7 }
  0x7c   : > { %665 = vmatprep.subr.mxu1 %v966_v1  ;;  %667 = vmatprep.mubr.msk.f32.mxu1 %vm965_vm0, %v966_v1  ;;  %v674_v7 = vpack.c.bf16 %v289_v6, %v288_v4  ;;  %v291_v9 = vld [vmem:[#allocation8 + $0x28] sm:$0xff]  ;;  %v292_v11 = vld [vmem:[#allocation8 + $0x30] sm:$0xff]  ;;  %v293_v12 = vld [vmem:[#allocation8 + $0x38] sm:$0xff]  ;;  %s280_s30 = scalar_lea.vmem [#allocation9], %s1172_s2  ;;  %s1202_s19 = scalar_lea.hbm %s1255_s4, %s608_s29 }
  0x7d   : > { %672 = vmatpush3.bf16.msra.mxu0 %v671_v5  ;;  %v677_v10 = vpack.c.bf16 %v291_v9, %v290_v8  ;;  %v680_v13 = vpack.c.bf16 %v293_v12, %v292_v11  ;;  %v294_v14 = vld [vmem:[#allocation8 + $0x40] sm:$0xff]  ;;  %v295_v15 = vld [vmem:[#allocation8 + $0x48] sm:$0xff]  ;;  %v296_v17 = vld [vmem:[#allocation8 + $0x50] sm:$0xff]  ;;  %s479_s27 = sshll.u32 %s280_s30, 4  ;;  %s465_s6 = scalar_lea.sflag [#allocation5], %s1169_s10  ;;  %s1204_s27 = int_to_ptr.vmem [resolvable:$true] %s479_s27 }
  0x7e   : > { %673 = vmatprep.subr.bf16.mxu0 %v964_v0  ;;  %v683_v16 = vpack.c.bf16 %v295_v15, %v294_v14  ;;  %v297_v18 = vld [vmem:[#allocation8 + $0x58] sm:$0xff]  ;;  %v298_v20 = vld [vmem:[#allocation8 + $0x60] sm:$0xff]  ;;  %v299_v21 = vld [vmem:[#allocation8 + $0x68] sm:$0xff]  ;;  %s867_s11 = scalar_lea.vmem %s1204_s27, 128  ;;  %p1278_p0 = scmp.ne.s32.totalorder %s1272_s28, 0 }
  0x7f   : > { %v686_v19 = vpack.c.bf16 %v297_v18, %v296_v17  ;;  %v689_v22 = vpack.c.bf16 %v299_v21, %v298_v20  ;;  %v300_v23 = vld [vmem:[#allocation8 + $0x70] sm:$0xff]  ;;  %v301_v24 = vld [vmem:[#allocation8 + $0x78] sm:$0xff]  ;;  %v285_v26 = vld [vmem:[%s238_s22] sm:$0xff]  ;;  %p868_p12 = scmp.ne.s32.totalorder %s1204_s27, %s867_s11  ;;  %s967_s18 = smov [#allocation9]  }
  0x80   : > { %v692_v25 = vpack.c.bf16 %v301_v24, %v300_v23  ;;  %v373_v27 = vld [vmem:[%s247_s5] sm:$0xff]  ;;  %v606_v35 = vld [vmem:[%s1254_s3] ss:$0 sm:$0xff]  ;;  %s871_s13 = sshll.u32 %s967_s18, 4  ;;  %s872_s13 = int_to_ptr.vmem [resolvable:$false] %s871_s13 }
  0x81   : > { %675 = vmatpush3.bf16.msra.mxu0 %v674_v7  ;;  %v375_v28 = vsel %vm374_vm1, %v373_v27, 0.0  ;;  %p869_p5 = pnand %p868_p12, %p1278_p0  ;;  %s873_s9 = scalar_lea.vmem %s872_s13, 256 }
  0x82   : > { %676 = vmatprep.subr.bf16.mxu0 %v964_v0  ;;  %376 = vadd.xlane.f32.xlu0 %v375_v28  ;;  %p874_p1 = scmp.lt.s32.totalorder %s1204_s27, %s872_s13  ;;  %p875_p2 = scmp.lt.s32.totalorder %s873_s9, %s867_s11 }
  0x83   : > { %p870_p9 = pneg %p869_p5 }
  0x84   : > { %p876_p7 = por %p875_p2, %p874_p1 }
  0x85   : > { %678 = vmatpush3.bf16.msra.mxu0 %v677_v10 }
  0x86   : > { %679 = vmatprep.subr.bf16.mxu0 %v964_v0  ;;  %p877_p4 = pnand %p876_p7, %p870_p9 }
  0x89   : > { %681 = vmatpush3.bf16.msra.mxu0 %v680_v13 }
  0x8a   : > { %682 = vmatprep.subr.bf16.mxu0 %v964_v0 }
  0x8d   : > { %684 = vmatpush3.bf16.msra.mxu0 %v683_v16 }
  0x8e   : > { %685 = vmatprep.subr.bf16.mxu0 %v964_v0 }
  0x91   : > { %687 = vmatpush3.bf16.msra.mxu0 %v686_v19 }
  0x92   : > { %688 = vmatprep.subr.bf16.mxu0 %v964_v0 }
  0x95   : > { %690 = vmatpush3.bf16.msra.mxu0 %v689_v22 }
  0x96   : > { %691 = vmatprep.subr.bf16.mxu0 %v964_v0 }
  0x99   : > { %693 = vmatpush3.bf16.msra.mxu0 %v692_v25 }
  0x9c   : > { %663 = vmatmul.mubr.f32.vlgmr.msra.gmra.mrb[0].mxu0 %v285_v26 }
 0x10f   : > { %v377_v31 = vpop.xlane.xlu0 %376 }
 0x110   : > { %v378_v32 = vadd.f32 1.0, %v377_v31 }
 0x112   : > { %777 = vrcp.f32 %v378_v32 }
 0x11c   : > { %v778_v33 = vpop.eup %777 }
 0x16f   : > { %v368_v29 = vpop.f32.mrb[0].mxu0 }
 0x170   : > { %v664_v30 = vpop.f32.mrb[1].mxu0  ;;  %666 = vmatpush3.msra.mxu1 %v368_v29 }
 0x171   : > { %668 = vmatmul.mubr.msk.f32.vlgmr.msra.gmra.mrb[0].mxu1 %vm374_vm1, %v373_v27 }
 0x244   : > { %v449_v34 = vpop.f32.mrb[0].mxu1 }
 0x245   : > { %v454_v36 = vmul.f32 %v778_v33, %v449_v34  ;;  %v669_v37 = vpop.f32.mrb[1].mxu1 }
 0x247   : > { %v462_v38 = vadd.f32 %v606_v35, %v454_v36 }
 0x249   : > { %463 = vst [vmem:[%s280_s30] sm:$0xff] %v462_v38 }
 0x24a   : > { %880 = shalt.err (!%p877_p4)
}
 0x24b   : > { %s881_s10 = scalar_lea.hbm %s1202_s19, 128  ;;  %s885_s22 = scalar_lea.hbm %s1255_s4, 256 }
 0x24c   : > { %p882_p8 = scmp.ne.s32.totalorder %s1202_s19, %s881_s10  ;;  %p886_p10 = scmp.lt.u32.totalorder %s1202_s19, %s1255_s4 }
 0x24d   : > { %p887_p13 = scmp.lt.u32.totalorder %s885_s22, %s881_s10  ;;  %p889_p12 = scmp.lt.u32.totalorder %s881_s10, %s1202_s19 }
 0x24e   : > { %p883_p11 = pnand %p882_p8, %p1278_p0 }
 0x24f   : > { %p888_p3 = por %p887_p13, %p886_p10 }
 0x250   : > { %p884_p6 = pneg %p883_p11 }
 0x251   : > { %p890_p5 = por %p889_p12, %p888_p3 }
 0x253   : > { %p891_p9 = pnand %p890_p5, %p884_p6 }
 0x255   : > { %894 = shalt.err (!%p891_p9)
}
 0x256   : > { %702 = dma.vmem_to_hbm [thread:$0]  (%p1278_p0), %s1204_s27, 128, %s1202_s19, %s465_s6  }
 0x257 PF: > { %s491_s5 = sand.u32 1, %s937_s15   ;;  %p1279_p1 = scmp.ne.s32.totalorder %s1265_s24, 0 }
 0x258   : > { %p1280_p2 = scmp.ge.s32.totalorder %s957_s20, 2  ;;  %s492_s21 = scalar_lea.sflag [#allocation5], %s491_s5 }
 0x25a   : > { %p716_p7 = pnand %p1280_p2, %p1279_p1 }
 0x25c   : > { %932 = dma.done.wait (!%p716_p7), %s492_s21, 128  }
 0x25d   : > { %934 = vsyncadd (!%p716_p7), %s492_s21, 4294967168  ;;  %s23_s20 = sadd.s32 1, %s957_s20   ;;  %s1281_s18 = sld [smem:[#allocation14_spill]] }
 0x25e   : > { %p20_p4 = scmp.ge.s32.totalorder %s23_s20, 4   ;;  %s1282_s19 = sld [smem:[#allocation15_spill]] }
 0x25f   : > { %s1283_s15 = smov %s941_s16  ;;  %s1284_s16 = smov %s945_s17 }
 0x260   : > { %s1285_s17 = smov %s1096_s7  ;;  %22 = sbr.rel (!%p20_p4) target bundleno = 10 (0xa), region = 102 }
 0x267   :  { %497 = vsyncpa [#allocation4], 1 }
 0x268   :  { %499 = vsyncpa [#allocation4 + $0x1], 1 }
 0x269   :  { %500 = vsyncpa [#allocation7], 1 }
 0x26a   :  { %502 = vsyncpa [#allocation7 + $0x1], 1 }
 0x26b   :  { %503 = vsyncpa [#allocation5], 1 }
 0x26c   :  { %505 = vsyncpa [#allocation5 + $0x1], 1 }

</bundles_post_ra>
